<compile_context>
chip_gen: v7x
topology: tpu7x:2x2x1
jax: 0.10.0
libtpu: 0.0.40
codegen_flags: <defaults>
</compile_context>

<pallas_src>
import jax
import jax.numpy as jnp
from jax.experimental import pallas as pl
from jax.experimental.pallas import tpu as pltpu

# Model sizes (consistent with the module: input_size -> hidden -> classes).
INPUT_SIZE = 32
HIDDEN_SIZE = 128
NUM_CLASSES = 8
BATCH = 512

LANE = 128
SUBLANE = 8
MAX_BLOCK_BATCH = 2048   # per-step row cap (safe on v7x's 64 MiB VMEM)


def _round_up(x, m):
    return ((x + m - 1) // m) * m


def _num_tensorcores():
    """v7x has 2 TensorCores per chip; v5e/v6e have 1 (grid is a serial loop)."""
    try:
        kind = jax.devices()[0].device_kind.lower()
    except Exception:
        kind = ""
    return 2 if "v7" in kind else 1


def mlp_kernel(x_ref, w1_ref, b1_ref, w2_ref, b2_ref, o_ref):
    # fc1: MXU matmul (bf16 inputs, f32 accumulation) + bias + ReLU in f32.
    x = x_ref[...].astype(jnp.bfloat16)          # no-op if x arrives as bf16
    h = jnp.dot(x, w1_ref[...], preferred_element_type=jnp.float32)
    h = jnp.maximum(h + b1_ref[...], 0.0)        # (1, H) bias broadcasts over rows
    # fc2: output dim is lane-padded to 128 -> full, unmasked vst of bf16.
    out = jnp.dot(h.astype(jnp.bfloat16), w2_ref[...],
                  preferred_element_type=jnp.float32)
    o_ref[...] = (out + b2_ref[...]).astype(o_ref.dtype)


def prepare_params(w1, b1, w2, b2):
    """One-time weight prep (hoisted out of the per-call hot path):
       pre-cast w1/w2 to bf16 and lane-pad w2/b2 to a multiple of 128."""
    C = w2.shape[1]
    c_pad = _round_up(C, LANE)
    if c_pad != C:
        w2 = jnp.pad(w2, ((0, 0), (0, c_pad - C)))
        b2 = jnp.pad(b2, ((0, 0), (0, c_pad - C)))
    return (w1.astype(jnp.bfloat16), b1.astype(jnp.float32),
            w2.astype(jnp.bfloat16), b2.astype(jnp.float32), C)


def gesture_model_forward(x, params, *, num_tensorcores=None):
    """x: (B, input_size); params from prepare_params() -> (B, C) f32 logits."""
    w1, b1, w2, b2, C = params
    B, in_features = x.shape
    H = w1.shape[1]
    c_pad = w2.shape[1]

    if num_tensorcores is None:
        num_tensorcores = _num_tensorcores()

    # One tile per TensorCore; more steps only when B exceeds the per-step cap.
    steps = max(num_tensorcores, pl.cdiv(B, MAX_BLOCK_BATCH))
    if num_tensorcores > 1 and steps % num_tensorcores:
        steps = _round_up(steps, num_tensorcores)

    if steps == 1:
        # Full-array block: no (8,128) divisibility constraint, no batch pad.
        tb, b_pad = B, B
    else:
        tb = _round_up(pl.cdiv(B, steps), SUBLANE)
        b_pad = tb * steps
        if b_pad != B:                      # only ragged batches pay a pad copy
            x = jnp.pad(x, ((0, b_pad - B), (0, 0)))

    bytes_accessed = (b_pad * in_features * x.dtype.itemsize   # x
                      + w1.size * 2 + w2.size * 2              # bf16 weights
                      + b1.size * 4 + b2.size * 4              # f32 biases
                      + b_pad * c_pad * 2)                     # bf16 output
    cost = pl.CostEstimate(
        flops=2 * b_pad * (in_features * H + H * c_pad),
        transcendentals=0,
        bytes_accessed=bytes_accessed)

    out_padded = pl.pallas_call(
        mlp_kernel,
        out_shape=jax.ShapeDtypeStruct((b_pad, c_pad), jnp.bfloat16),
        grid=(steps,),
        in_specs=[
            # x: tiled over batch.
            pl.BlockSpec((tb, in_features), lambda i: (i, 0)),
            # Weights / biases: constant block, resident in VMEM across the grid.
            pl.BlockSpec((in_features, H), lambda i: (0, 0)),
            pl.BlockSpec((1, H), lambda i: (0, 0)),
            pl.BlockSpec((H, c_pad), lambda i: (0, 0)),
            pl.BlockSpec((1, c_pad), lambda i: (0, 0)),
        ],
        out_specs=pl.BlockSpec((tb, c_pad), lambda i: (i, 0)),
        compiler_params=pltpu.CompilerParams(
            dimension_semantics=("parallel",)),
        cost_estimate=cost,
    )(x, w1, b1, w2, b2)

    # Slice off lane / batch padding; tiny cast back to f32 logits.
    return out_padded[:B, :C].astype(jnp.float32)


def init_params(key):
    """Deterministic param init matching nn.Linear shapes (stored transposed)."""
    k1, k2, k3, k4 = jax.random.split(key, 4)
    lim1 = 1.0 / (INPUT_SIZE ** 0.5)
    lim2 = 1.0 / (HIDDEN_SIZE ** 0.5)
    w1 = jax.random.uniform(k1, (INPUT_SIZE, HIDDEN_SIZE), jnp.float32, -lim1, lim1)
    b1 = jax.random.uniform(k2, (1, HIDDEN_SIZE), jnp.float32, -lim1, lim1)
    w2 = jax.random.uniform(k3, (HIDDEN_SIZE, NUM_CLASSES), jnp.float32, -lim2, lim2)
    b2 = jax.random.uniform(k4, (1, NUM_CLASSES), jnp.float32, -lim2, lim2)
    return w1, b1, w2, b2


if __name__ == "__main__":
    key = jax.random.PRNGKey(0)
    kx, kp = jax.random.split(key)
    x = jax.random.normal(kx, (BATCH, INPUT_SIZE), dtype=jnp.float32)
    w1, b1, w2, b2 = init_params(kp)
    params = prepare_params(w1, b1, w2, b2)   # one-time weight prep

    out = gesture_model_forward(x, params)
    out = jax.block_until_ready(out)
    assert out.shape == (BATCH, NUM_CLASSES)

    # Reference mirroring the kernel's bf16-input / f32-accumulate matmuls
    # and the bf16 output writeback.
    xb, w1b = x.astype(jnp.bfloat16), w1.astype(jnp.bfloat16)
    h_ref = jnp.maximum(
        jnp.dot(xb, w1b, preferred_element_type=jnp.float32) + b1, 0.0)
    ref = jnp.dot(h_ref.astype(jnp.bfloat16), w2.astype(jnp.bfloat16),
                  preferred_element_type=jnp.float32) + b2
    ref_b = ref.astype(jnp.bfloat16).astype(jnp.float32)
    assert jnp.allclose(out, ref_b, atol=2e-2, rtol=2e-2), float(
        jnp.max(jnp.abs(out - ref_b)))

    # Coarse check against the pure-f32 forward as well.
    ref32 = jnp.maximum(x @ w1 + b1, 0.0) @ w2 + b2
    assert jnp.allclose(out, ref32, atol=5e-2, rtol=5e-2)

    print("KERNEL_OK")
</pallas_src>

<mosaic_0001>
module attributes {stable_mosaic.version = 11 : i64} {
  func.func @mlp_kernel(%arg0: i32, %arg1: memref<512x32xf32, #tpu.memory_space<vmem>>, %arg2: memref<32x128xbf16, #tpu.memory_space<vmem>>, %arg3: memref<1x128xf32, #tpu.memory_space<vmem>>, %arg4: memref<128x128xbf16, #tpu.memory_space<vmem>>, %arg5: memref<1x128xf32, #tpu.memory_space<vmem>>, %arg6: memref<512x128xbf16, #tpu.memory_space<vmem>>) attributes {dimension_semantics = [#tpu.dimension_semantics<parallel>], iteration_bounds = array<i64: 1>, scalar_prefetch = 0 : i64, scratch_operands = 0 : i64, tpu.core_type = #tpu.core_type<tc>, window_params = [{transform_indices = @transform_0, window_bounds = array<i64: 512, 32>}, {pipeline_mode = #tpu.pipeline_mode<synchronous>, transform_indices = @transform_1, window_bounds = array<i64: 32, 128>}, {pipeline_mode = #tpu.pipeline_mode<synchronous>, transform_indices = @transform_2, window_bounds = array<i64: 1, 128>}, {pipeline_mode = #tpu.pipeline_mode<synchronous>, transform_indices = @transform_3, window_bounds = array<i64: 128, 128>}, {pipeline_mode = #tpu.pipeline_mode<synchronous>, transform_indices = @transform_4, window_bounds = array<i64: 1, 128>}, {transform_indices = @transform_5, window_bounds = array<i64: 512, 128>}]} {
    %c0 = arith.constant 0 : index
    %c0_0 = arith.constant 0 : index
    %0 = vector.load %arg1[%c0, %c0_0] : memref<512x32xf32, #tpu.memory_space<vmem>>, vector<512x32xf32>
    %1 = arith.truncf %0 : vector<512x32xf32> to vector<512x32xbf16>
    %c0_1 = arith.constant 0 : index
    %c0_2 = arith.constant 0 : index
    %2 = vector.load %arg2[%c0_1, %c0_2] : memref<32x128xbf16, #tpu.memory_space<vmem>>, vector<32x128xbf16>
    %cst = arith.constant dense<0.000000e+00> : vector<512x128xf32>
    %3 = tpu.matmul %1, %2, %cst {dimension_numbers = #tpu.dot_dimension_numbers<[1], [0], [0], [1], [0, 0, 1, 1], [], []>} : vector<512x32xbf16>, vector<32x128xbf16>, vector<512x128xf32> -> vector<512x128xf32>
    %c0_3 = arith.constant 0 : index
    %c0_4 = arith.constant 0 : index
    %4 = vector.load %arg3[%c0_3, %c0_4] : memref<1x128xf32, #tpu.memory_space<vmem>>, vector<1x128xf32>
    %5 = vector.broadcast %4 : vector<1x128xf32> to vector<512x128xf32>
    %6 = arith.addf %3, %5 : vector<512x128xf32>
    %cst_5 = arith.constant 0.000000e+00 : f32
    %7 = vector.broadcast %cst_5 : f32 to vector<512x128xf32>
    %8 = arith.maximumf %6, %7 : vector<512x128xf32>
    %9 = arith.truncf %8 : vector<512x128xf32> to vector<512x128xbf16>
    %c0_6 = arith.constant 0 : index
    %c0_7 = arith.constant 0 : index
    %10 = vector.load %arg4[%c0_6, %c0_7] : memref<128x128xbf16, #tpu.memory_space<vmem>>, vector<128x128xbf16>
    %cst_8 = arith.constant dense<0.000000e+00> : vector<512x128xf32>
    %11 = tpu.matmul %9, %10, %cst_8 {dimension_numbers = #tpu.dot_dimension_numbers<[1], [0], [0], [1], [0, 0, 1, 1], [], []>} : vector<512x128xbf16>, vector<128x128xbf16>, vector<512x128xf32> -> vector<512x128xf32>
    %c0_9 = arith.constant 0 : index
    %c0_10 = arith.constant 0 : index
    %12 = vector.load %arg5[%c0_9, %c0_10] : memref<1x128xf32, #tpu.memory_space<vmem>>, vector<1x128xf32>
    %13 = vector.broadcast %12 : vector<1x128xf32> to vector<512x128xf32>
    %14 = arith.addf %11, %13 : vector<512x128xf32>
    %15 = arith.truncf %14 : vector<512x128xf32> to vector<512x128xbf16>
    %c0_11 = arith.constant 0 : index
    %c0_12 = arith.constant 0 : index
    %16 = vector.load %arg6[%c0_11, %c0_12] : memref<512x128xbf16, #tpu.memory_space<vmem>>, vector<512x128xbf16>
    tpu.vector_store %arg6[%c0_11, %c0_12], %15 {strides = array<i32>} : memref<512x128xbf16, #tpu.memory_space<vmem>>, vector<512x128xbf16>,
    return
  }
  func.func @transform_0(%arg0: i32) -> (i32, i32) {
    %c0_i32 = arith.constant 0 : i32
    %c0_i32_0 = arith.constant 0 : i32
    return %arg0, %c0_i32 : i32, i32
  }
  func.func @transform_1(%arg0: i32) -> (i32, i32) {
    %c0_i32 = arith.constant 0 : i32
    %c0_i32_0 = arith.constant 0 : i32
    %c0_i32_1 = arith.constant 0 : i32
    return %c0_i32, %c0_i32_0 : i32, i32
  }
  func.func @transform_2(%arg0: i32) -> (i32, i32) {
    %c0_i32 = arith.constant 0 : i32
    %c0_i32_0 = arith.constant 0 : i32
    %c0_i32_1 = arith.constant 0 : i32
    return %c0_i32, %c0_i32_0 : i32, i32
  }
  func.func @transform_3(%arg0: i32) -> (i32, i32) {
    %c0_i32 = arith.constant 0 : i32
    %c0_i32_0 = arith.constant 0 : i32
    %c0_i32_1 = arith.constant 0 : i32
    return %c0_i32, %c0_i32_0 : i32, i32
  }
  func.func @transform_4(%arg0: i32) -> (i32, i32) {
    %c0_i32 = arith.constant 0 : i32
    %c0_i32_0 = arith.constant 0 : i32
    %c0_i32_1 = arith.constant 0 : i32
    return %c0_i32, %c0_i32_0 : i32, i32
  }
  func.func @transform_5(%arg0: i32) -> (i32, i32) {
    %c0_i32 = arith.constant 0 : i32
    %c0_i32_0 = arith.constant 0 : i32
    return %arg0, %c0_i32 : i32, i32
  }
}

</mosaic_0001>

<bundles_post_ra>
// kernel: tpu_custom_call.1
= control target key start
LH: loop header
LB: loop body
LE: loop exit
PB: predicated region body
PF: predicated region fallthrough
CT: control target
= control target key end

     0   :  { %vm141_vm0 = vcmask 261120   ;;  %s2394_s0 = inlined_call_operand.vmem [shape: f32[512,32], index: 0, kind: input, shape index: {}]   ;;  %s2395_s1 = inlined_call_operand.vmem [shape: bf16[32,128], index: 1, kind: input, shape index: {}]   ;;  %s2396_s2 = inlined_call_operand.vmem [shape: f32[1,128], index: 2, kind: input, shape index: {}]   ;;  %s2397_s3 = inlined_call_operand.vmem [shape: bf16[128,128], index: 3, kind: input, shape index: {}]   ;;  %s2398_s4 = inlined_call_operand.vmem [shape: f32[1,128], index: 4, kind: input, shape index: {}]   ;;  %s2399_s5 = inlined_call_operand.hbm [shape: bf16[512,128], index: 5, kind: output, shape index: {}]  }
   0x1   :  { %v1923_v0 = vld [vmem:[%s2395_s1] sm:$0xff]   ;;  %v1924_v1 = vld [vmem:[%s2395_s1 + $0x8] sm:$0xff]   ;;  %v24_v5 = vld [vmem:[%s2394_s0 + $0x10] sm:$0xff] }
   0x2   :  { %1756 = vmatprep.subr.bf16.mxu0 %v1923_v0  ;;  %v22_v2 = vld [vmem:[%s2394_s0] sm:$0xff]  ;;  %v23_v3 = vld [vmem:[%s2394_s0 + $0x8] sm:$0xff]  ;;  %v25_v6 = vld [vmem:[%s2394_s0 + $0x18] sm:$0xff] }
   0x3   :  { %1757 = vmatpush3.bf16.msra.mxu0 %v1923_v0  ;;  %v86_v4 = vpack.c.bf16 %v23_v3, %v22_v2  ;;  %v26_v7 = vld [vmem:[%s2394_s0 + $0x20] sm:$0xff]  ;;  %v27_v8 = vld [vmem:[%s2394_s0 + $0x28] sm:$0xff]  ;;  %v87_v9 = vpack.c.bf16 %v25_v6, %v24_v5  ;;  %v28_v11 = vld [vmem:[%s2394_s0 + $0x30] sm:$0xff] }
   0x4   :  { %1758 = vmatprep.subr.bf16.mxu0 %v1924_v1  ;;  %v88_v10 = vpack.c.bf16 %v27_v8, %v26_v7  ;;  %v29_v12 = vld [vmem:[%s2394_s0 + $0x38] sm:$0xff]  ;;  %v30_v13 = vld [vmem:[%s2394_s0 + $0x40] sm:$0xff]  ;;  %v31_v14 = vld [vmem:[%s2394_s0 + $0x48] sm:$0xff] }
   0x5   :  { %1760 = vmatprep.mubr.msk.bf16.mxu0 %vm141_vm0, %v86_v4  ;;  %v89_v15 = vpack.c.bf16 %v29_v12, %v28_v11  ;;  %v90_v16 = vpack.c.bf16 %v31_v14, %v30_v13  ;;  %v32_v17 = vld [vmem:[%s2394_s0 + $0x50] sm:$0xff]  ;;  %v33_v18 = vld [vmem:[%s2394_s0 + $0x58] sm:$0xff]  ;;  %v34_v19 = vld [vmem:[%s2394_s0 + $0x60] sm:$0xff] }
   0x6   :  { %v35_v20 = vld [vmem:[%s2394_s0 + $0x68] sm:$0xff]  ;;  %v91_v21 = vpack.c.bf16 %v33_v18, %v32_v17  ;;  %v1925_v23 = vld [vmem:[%s2397_s3] sm:$0xff]   ;;  %v36_v24 = vld [vmem:[%s2394_s0 + $0x70] sm:$0xff] }
   0x7   :  { %1759 = vmatpush3.bf16.msra.mxu0 %v1924_v1  ;;  %v92_v22 = vpack.c.bf16 %v35_v20, %v34_v19  ;;  %v37_v25 = vld [vmem:[%s2394_s0 + $0x78] sm:$0xff]  ;;  %v1926_v26 = vld [vmem:[%s2397_s3 + $0x8] sm:$0xff]   ;;  %v38_v27 = vld [vmem:[%s2394_s0 + $0x80] sm:$0xff]  ;;  %1904 = vmatprep.subr.bf16.mxu1 %v1925_v23 }
   0x8   :  { %1824 = vmatprep.subr.bf16.mxu0 %v1925_v23  ;;  %v39_v28 = vld [vmem:[%s2394_s0 + $0x88] sm:$0xff]  ;;  %v1927_v29 = vld [vmem:[%s2397_s3 + $0x10] sm:$0xff]   ;;  %1912 = vmatpush3.bf16.msra.mxu1 %v1925_v23  ;;  %v93_v30 = vpack.c.bf16 %v37_v25, %v36_v24 }
   0x9   :  { %1905 = vmatprep.subr.bf16.mxu1 %v1926_v26 }
   0xa   :  { %1761 = vmatmul.mubr.msk.bf16.vlgmr.msra.gmra.mrb[0].mxu0 %vm141_vm0, %v87_v9 }
   0xb   :  { %1764 = vmatprep.mubr.msk.bf16.mxu0 %vm141_vm0, %v88_v10  ;;  %1825 = vmatpush3.bf16.msra.mxu0 %v1925_v23 }
   0xc   :  { %1826 = vmatprep.subr.bf16.mxu0 %v1926_v26 }
  0x12   :  { %1765 = vmatmul.mubr.msk.bf16.gmra.mrb[4].mxu0 %vm141_vm0, %v89_v15 }
  0x13   :  { %1768 = vmatprep.mubr.msk.bf16.mxu0 %vm141_vm0, %v90_v16 }
  0x1a   :  { %1769 = vmatmul.mubr.msk.bf16.gmra.mrb[8].mxu0 %vm141_vm0, %v91_v21 }
  0x1b   :  { %1772 = vmatprep.mubr.msk.bf16.mxu0 %vm141_vm0, %v92_v22 }
  0x1c   :  { %10 = vsyncpa [#allocation3], 0  ;;  %v94_v31 = vpack.c.bf16 %v39_v28, %v38_v27  ;;  %1827 = vmatpush3.bf16.msra.mxu0 %v1926_v26  ;;  %v1928_v32 = vld [vmem:[%s2397_s3 + $0x18] sm:$0xff]   ;;  %1913 = vmatpush3.bf16.msra.mxu1 %v1926_v26  ;;  %v40_v33 = vld [vmem:[%s2394_s0 + $0x90] sm:$0xff] }
  0x1d   :  { %1828 = vmatprep.subr.bf16.mxu0 %v1927_v29  ;;  %1906 = vmatprep.subr.bf16.mxu1 %v1927_v29  ;;  %v41_v34 = vld [vmem:[%s2394_s0 + $0x98] sm:$0xff]  ;;  %v42_v35 = vld [vmem:[%s2394_s0 + $0xa0] sm:$0xff]  ;;  %v43_v36 = vld [vmem:[%s2394_s0 + $0xa8] sm:$0xff] }
  0x1e   :  { %v1929_v37 = vld [vmem:[%s2397_s3 + $0x20] sm:$0xff]   ;;  %v95_v38 = vpack.c.bf16 %v41_v34, %v40_v33  ;;  %v96_v39 = vpack.c.bf16 %v43_v36, %v42_v35  ;;  %v1930_v40 = vld [vmem:[%s2397_s3 + $0x28] sm:$0xff]   ;;  %v44_v41 = vld [vmem:[%s2394_s0 + $0xb0] sm:$0xff] }
  0x1f   :  { %v45_v42 = vld [vmem:[%s2394_s0 + $0xb8] sm:$0xff]  ;;  %v46_v43 = vld [vmem:[%s2394_s0 + $0xc0] sm:$0xff]  ;;  %v47_v44 = vld [vmem:[%s2394_s0 + $0xc8] sm:$0xff] }
  0x20   :  { %1829 = vmatpush3.bf16.msra.mxu0 %v1927_v29  ;;  %1914 = vmatpush3.bf16.msra.mxu1 %v1927_v29  ;;  %v97_v45 = vpack.c.bf16 %v45_v42, %v44_v41  ;;  %v98_v46 = vpack.c.bf16 %v47_v44, %v46_v43  ;;  %v48_v47 = vld [vmem:[%s2394_s0 + $0xd0] sm:$0xff]  ;;  %v49_v48 = vld [vmem:[%s2394_s0 + $0xd8] sm:$0xff]  ;;  %v50_v49 = vld [vmem:[%s2394_s0 + $0xe0] sm:$0xff] }
  0x21   :  { %1830 = vmatprep.subr.bf16.mxu0 %v1928_v32  ;;  %1907 = vmatprep.subr.bf16.mxu1 %v1928_v32  ;;  %v51_v50 = vld [vmem:[%s2394_s0 + $0xe8] sm:$0xff]  ;;  %v99_v51 = vpack.c.bf16 %v49_v48, %v48_v47  ;;  %v52_v53 = vld [vmem:[%s2394_s0 + $0xf0] sm:$0xff]  ;;  %v53_v54 = vld [vmem:[%s2394_s0 + $0xf8] sm:$0xff] }
  0x22   :  { %1773 = vmatmul.mubr.msk.bf16.gmra.mrb[12].mxu0 %vm141_vm0, %v93_v30  ;;  %v100_v52 = vpack.c.bf16 %v51_v50, %v50_v49  ;;  %v54_v55 = vld [vmem:[%s2394_s0 + $0x100] sm:$0xff]  ;;  %v55_v56 = vld [vmem:[%s2394_s0 + $0x108] sm:$0xff]  ;;  %v101_v57 = vpack.c.bf16 %v53_v54, %v52_v53  ;;  %v56_v59 = vld [vmem:[%s2394_s0 + $0x110] sm:$0xff] }
  0x23   :  { %1776 = vmatprep.mubr.msk.bf16.mxu0 %vm141_vm0, %v94_v31  ;;  %v102_v58 = vpack.c.bf16 %v55_v56, %v54_v55  ;;  %v57_v60 = vld [vmem:[%s2394_s0 + $0x118] sm:$0xff]  ;;  %v58_v61 = vld [vmem:[%s2394_s0 + $0x120] sm:$0xff]  ;;  %v59_v62 = vld [vmem:[%s2394_s0 + $0x128] sm:$0xff] }
  0x24   :  { %1831 = vmatpush3.bf16.msra.mxu0 %v1928_v32  ;;  %1915 = vmatpush3.bf16.msra.mxu1 %v1928_v32  ;;  %v103_v63 = vpack.c.bf16 %v57_v60, %v56_v59  ;;  %v104_v0 = vpack.c.bf16 %v59_v62, %v58_v61  ;;  %v60_v1 = vld [vmem:[%s2394_s0 + $0x130] sm:$0xff]  ;;  %v61_v2 = vld [vmem:[%s2394_s0 + $0x138] sm:$0xff]  ;;  %v62_v3 = vld [vmem:[%s2394_s0 + $0x140] sm:$0xff] }
  0x25   :  { %1832 = vmatprep.subr.bf16.mxu0 %v1929_v37  ;;  %1908 = vmatprep.subr.bf16.mxu1 %v1929_v37  ;;  %v63_v4 = vld [vmem:[%s2394_s0 + $0x148] sm:$0xff]  ;;  %v105_v5 = vpack.c.bf16 %v61_v2, %v60_v1  ;;  %v64_v7 = vld [vmem:[%s2394_s0 + $0x150] sm:$0xff]  ;;  %v65_v8 = vld [vmem:[%s2394_s0 + $0x158] sm:$0xff] }
  0x26   :  { %v106_v6 = vpack.c.bf16 %v63_v4, %v62_v3  ;;  %v66_v9 = vld [vmem:[%s2394_s0 + $0x160] sm:$0xff]  ;;  %v67_v10 = vld [vmem:[%s2394_s0 + $0x168] sm:$0xff]  ;;  %v107_v11 = vpack.c.bf16 %v65_v8, %v64_v7  ;;  %v68_v13 = vld [vmem:[%s2394_s0 + $0x170] sm:$0xff] }
  0x27   :  { %v108_v12 = vpack.c.bf16 %v67_v10, %v66_v9  ;;  %v69_v14 = vld [vmem:[%s2394_s0 + $0x178] sm:$0xff]  ;;  %v70_v15 = vld [vmem:[%s2394_s0 + $0x180] sm:$0xff]  ;;  %v71_v16 = vld [vmem:[%s2394_s0 + $0x188] sm:$0xff] }
  0x28   :  { %1833 = vmatpush3.bf16.msra.mxu0 %v1929_v37  ;;  %1916 = vmatpush3.bf16.msra.mxu1 %v1929_v37  ;;  %v109_v17 = vpack.c.bf16 %v69_v14, %v68_v13  ;;  %v1931_v18 = vld [vmem:[%s2397_s3 + $0x30] sm:$0xff]   ;;  %v110_v19 = vpack.c.bf16 %v71_v16, %v70_v15  ;;  %v1932_v20 = vld [vmem:[%s2397_s3 + $0x38] sm:$0xff]   ;;  %v74_v23 = vld [vmem:[%s2394_s0 + $0x1a0] sm:$0xff] }
  0x29   :  { %1834 = vmatprep.subr.bf16.mxu0 %v1930_v40  ;;  %1909 = vmatprep.subr.bf16.mxu1 %v1930_v40  ;;  %v72_v21 = vld [vmem:[%s2394_s0 + $0x190] sm:$0xff]  ;;  %v73_v22 = vld [vmem:[%s2394_s0 + $0x198] sm:$0xff]  ;;  %v75_v24 = vld [vmem:[%s2394_s0 + $0x1a8] sm:$0xff] }
  0x2a   :  { %1777 = vmatmul.mubr.msk.bf16.gmra.mrb[16].mxu0 %vm141_vm0, %v95_v38  ;;  %v111_v25 = vpack.c.bf16 %v73_v22, %v72_v21  ;;  %v112_v26 = vpack.c.bf16 %v75_v24, %v74_v23  ;;  %v76_v27 = vld [vmem:[%s2394_s0 + $0x1b0] sm:$0xff]  ;;  %v77_v28 = vld [vmem:[%s2394_s0 + $0x1b8] sm:$0xff]  ;;  %v78_v29 = vld [vmem:[%s2394_s0 + $0x1c0] sm:$0xff] }
  0x2b   :  { %1780 = vmatprep.mubr.msk.bf16.mxu0 %vm141_vm0, %v96_v39  ;;  %v79_v30 = vld [vmem:[%s2394_s0 + $0x1c8] sm:$0xff]  ;;  %v113_v31 = vpack.c.bf16 %v77_v28, %v76_v27  ;;  %v80_v33 = vld [vmem:[%s2394_s0 + $0x1d0] sm:$0xff]  ;;  %v81_v34 = vld [vmem:[%s2394_s0 + $0x1d8] sm:$0xff] }
  0x2c   :  { %1835 = vmatpush3.bf16.msra.mxu0 %v1930_v40  ;;  %1917 = vmatpush3.bf16.msra.mxu1 %v1930_v40  ;;  %v114_v32 = vpack.c.bf16 %v79_v30, %v78_v29  ;;  %v82_v35 = vld [vmem:[%s2394_s0 + $0x1e0] sm:$0xff]  ;;  %v83_v36 = vld [vmem:[%s2394_s0 + $0x1e8] sm:$0xff]  ;;  %v115_v37 = vpack.c.bf16 %v81_v34, %v80_v33  ;;  %v84_v39 = vld [vmem:[%s2394_s0 + $0x1f0] sm:$0xff] }
  0x2d   :  { %1836 = vmatprep.subr.bf16.mxu0 %v1931_v18  ;;  %1910 = vmatprep.subr.bf16.mxu1 %v1931_v18  ;;  %v116_v38 = vpack.c.bf16 %v83_v36, %v82_v35  ;;  %v85_v40 = vld [vmem:[%s2394_s0 + $0x1f8] sm:$0xff]  ;;  %v2247_v42 = vld [vmem:[%s2396_s2] ss:$0 sm:$0xff] }
  0x2e   :  { %v117_v41 = vpack.c.bf16 %v85_v40, %v84_v39 }
  0x30   :  { %1837 = vmatpush3.bf16.msra.mxu0 %v1931_v18  ;;  %1918 = vmatpush3.bf16.msra.mxu1 %v1931_v18 }
  0x31   :  { %1838 = vmatprep.subr.bf16.mxu0 %v1932_v20  ;;  %1911 = vmatprep.subr.bf16.mxu1 %v1932_v20 }
  0x32   :  { %1781 = vmatmul.mubr.msk.bf16.gmra.mrb[20].mxu0 %vm141_vm0, %v97_v45 }
  0x33   :  { %1784 = vmatprep.mubr.msk.bf16.mxu0 %vm141_vm0, %v98_v46 }
  0x34   :  { %1839 = vmatpush3.bf16.msra.mxu0 %v1932_v20  ;;  %1919 = vmatpush3.bf16.msra.mxu1 %v1932_v20 }
  0x3a   :  { %1785 = vmatmul.mubr.msk.bf16.gmra.mrb[24].mxu0 %vm141_vm0, %v99_v51 }
  0x3b   :  { %1788 = vmatprep.mubr.msk.bf16.mxu0 %vm141_vm0, %v100_v52 }
  0x42   :  { %1789 = vmatmul.mubr.msk.bf16.gmra.mrb[28].mxu0 %vm141_vm0, %v101_v57 }
  0x43   :  { %1792 = vmatprep.mubr.msk.bf16.mxu0 %vm141_vm0, %v102_v58 }
  0x4a   :  { %1793 = vmatmul.mubr.msk.bf16.gmra.mrb[32].mxu0 %vm141_vm0, %v103_v63 }
  0x4b   :  { %1796 = vmatprep.mubr.msk.bf16.mxu0 %vm141_vm0, %v104_v0 }
  0x52   :  { %1797 = vmatmul.mubr.msk.bf16.gmra.mrb[36].mxu0 %vm141_vm0, %v105_v5 }
  0x53   :  { %1800 = vmatprep.mubr.msk.bf16.mxu0 %vm141_vm0, %v106_v6 }
  0x5a   :  { %1801 = vmatmul.mubr.msk.bf16.gmra.mrb[40].mxu0 %vm141_vm0, %v107_v11 }
  0x5b   :  { %1804 = vmatprep.mubr.msk.bf16.mxu0 %vm141_vm0, %v108_v12 }
  0x62   :  { %1805 = vmatmul.mubr.msk.bf16.gmra.mrb[44].mxu0 %vm141_vm0, %v109_v17 }
  0x63   :  { %1808 = vmatprep.mubr.msk.bf16.mxu0 %vm141_vm0, %v110_v19 }
  0x6a   :  { %1809 = vmatmul.mubr.msk.bf16.gmra.mrb[48].mxu0 %vm141_vm0, %v111_v25 }
  0x6b   :  { %1812 = vmatprep.mubr.msk.bf16.mxu0 %vm141_vm0, %v112_v26 }
  0x72   :  { %1813 = vmatmul.mubr.msk.bf16.gmra.mrb[52].mxu0 %vm141_vm0, %v113_v31 }
  0x73   :  { %1816 = vmatprep.mubr.msk.bf16.mxu0 %vm141_vm0, %v114_v32 }
  0x7a   :  { %1817 = vmatmul.mubr.msk.bf16.gmra.mrb[56].mxu0 %vm141_vm0, %v115_v37 }
  0x7b   :  { %1820 = vmatprep.mubr.msk.bf16.mxu0 %vm141_vm0, %v116_v38 }
  0x82   :  { %1821 = vmatmul.mubr.msk.bf16.gmra.mrb[60].mxu0 %vm141_vm0, %v117_v41 }
  0xdd   :  { %v1762_v43 = vpop.f32.mrb[0].mxu0 }
  0xde   :  { %v281_v44 = vadd.f32 %v1762_v43, %v2247_v42  ;;  %v272_v45 = vpop.f32.mrb[1].mxu0 }
  0xdf   :  { %v273_v46 = vadd.f32 %v2247_v42, %v272_v45  ;;  %v1763_v47 = vpop.f32.mrb[2].mxu0 }
  0xe0   :  { %v284_v48 = vadd.f32 %v1763_v47, %v2247_v42  ;;  %v275_v49 = vpop.f32.mrb[3].mxu0  ;;  %v529_v51 = vmax.f32 %v281_v44, 0.0 }
  0xe1   :  { %v276_v50 = vadd.f32 %v2247_v42, %v275_v49  ;;  %v527_v53 = vmax.f32 %v273_v46, 0.0 }
  0xe2   :  { %v530_v52 = vmax.f32 %v284_v48, 0.0 }
  0xe3   :  { %v528_v54 = vmax.f32 %v276_v50, 0.0 }
  0xe4   :  { %v592_v55 = vpack.c.bf16 %v530_v52, %v529_v51 }
  0xe5   :  { %v591_v56 = vpack.c.bf16 %v528_v54, %v527_v53  ;;  %v1766_v57 = vpop.f32.mrb[4].mxu0 }
  0xe6   :  { %v297_v58 = vadd.f32 %v1766_v57, %v2247_v42  ;;  %v288_v59 = vpop.f32.mrb[5].mxu0 }
  0xe7   :  { %v289_v60 = vadd.f32 %v2247_v42, %v288_v59  ;;  %v1767_v61 = vpop.f32.mrb[6].mxu0  ;;  %1840 = vmatprep.mubr.bf16.mxu0 %v591_v56 }
  0xe8   :  { %v300_v62 = vadd.f32 %v1767_v61, %v2247_v42  ;;  %v291_v63 = vpop.f32.mrb[7].mxu0  ;;  %1841 = vmatmul.mubr.bf16.vlgmr.msra.gmra.mrb[64].mxu0 %v592_v55  ;;  %v533_v1 = vmax.f32 %v297_v58, 0.0 }
  0xe9   :  { %v292_v0 = vadd.f32 %v2247_v42, %v291_v63  ;;  %v531_v3 = vmax.f32 %v289_v60, 0.0 }
  0xea   :  { %v534_v2 = vmax.f32 %v300_v62, 0.0 }
  0xeb   :  { %v532_v4 = vmax.f32 %v292_v0, 0.0 }
  0xec   :  { %v594_v5 = vpack.c.bf16 %v534_v2, %v533_v1 }
  0xed   :  { %v1770_v6 = vpop.f32.mrb[8].mxu0  ;;  %v593_v7 = vpack.c.bf16 %v532_v4, %v531_v3 }
  0xee   :  { %v313_v8 = vadd.f32 %v1770_v6, %v2247_v42  ;;  %v304_v9 = vpop.f32.mrb[9].mxu0 }
  0xef   :  { %v305_v10 = vadd.f32 %v2247_v42, %v304_v9  ;;  %v1771_v11 = vpop.f32.mrb[10].mxu0  ;;  %1844 = vmatprep.mubr.bf16.mxu1 %v593_v7 }
  0xf0   :  { %v316_v12 = vadd.f32 %v1771_v11, %v2247_v42  ;;  %v307_v13 = vpop.f32.mrb[11].mxu0  ;;  %1845 = vmatmul.mubr.bf16.vlgmr.msra.gmra.mrb[0].mxu1 %v594_v5  ;;  %v537_v15 = vmax.f32 %v313_v8, 0.0 }
  0xf1   :  { %v308_v14 = vadd.f32 %v2247_v42, %v307_v13  ;;  %v535_v17 = vmax.f32 %v305_v10, 0.0 }
  0xf2   :  { %v538_v16 = vmax.f32 %v316_v12, 0.0 }
  0xf3   :  { %v536_v18 = vmax.f32 %v308_v14, 0.0 }
  0xf4   :  { %v596_v19 = vpack.c.bf16 %v538_v16, %v537_v15 }
  0xf5   :  { %v595_v20 = vpack.c.bf16 %v536_v18, %v535_v17  ;;  %v1774_v21 = vpop.f32.mrb[12].mxu0 }
  0xf6   :  { %v329_v22 = vadd.f32 %v1774_v21, %v2247_v42  ;;  %v320_v23 = vpop.f32.mrb[13].mxu0 }
  0xf7   :  { %v321_v24 = vadd.f32 %v2247_v42, %v320_v23  ;;  %v1775_v25 = vpop.f32.mrb[14].mxu0  ;;  %1848 = vmatprep.mubr.bf16.mxu1 %v595_v20 }
  0xf8   :  { %v332_v26 = vadd.f32 %v1775_v25, %v2247_v42  ;;  %v323_v27 = vpop.f32.mrb[15].mxu0  ;;  %1849 = vmatmul.mubr.bf16.gmra.mrb[4].mxu1 %v596_v19  ;;  %v541_v29 = vmax.f32 %v329_v22, 0.0 }
  0xf9   :  { %v324_v28 = vadd.f32 %v2247_v42, %v323_v27  ;;  %v539_v31 = vmax.f32 %v321_v24, 0.0 }
  0xfa   :  { %v542_v30 = vmax.f32 %v332_v26, 0.0 }
  0xfb   :  { %v540_v32 = vmax.f32 %v324_v28, 0.0 }
  0xfc   :  { %v598_v33 = vpack.c.bf16 %v542_v30, %v541_v29 }
  0xfd   :  { %v597_v34 = vpack.c.bf16 %v540_v32, %v539_v31  ;;  %v1778_v35 = vpop.f32.mrb[16].mxu0 }
  0xfe   :  { %v345_v36 = vadd.f32 %v1778_v35, %v2247_v42  ;;  %v336_v37 = vpop.f32.mrb[17].mxu0 }
  0xff   :  { %v337_v38 = vadd.f32 %v2247_v42, %v336_v37  ;;  %v1779_v39 = vpop.f32.mrb[18].mxu0  ;;  %1852 = vmatprep.mubr.bf16.mxu1 %v597_v34 }
 0x100   :  { %v348_v40 = vadd.f32 %v1779_v39, %v2247_v42  ;;  %v339_v41 = vpop.f32.mrb[19].mxu0  ;;  %1853 = vmatmul.mubr.bf16.gmra.mrb[8].mxu1 %v598_v33  ;;  %v545_v44 = vmax.f32 %v345_v36, 0.0 }
 0x101   :  { %v340_v43 = vadd.f32 %v2247_v42, %v339_v41  ;;  %v543_v46 = vmax.f32 %v337_v38, 0.0 }
 0x102   :  { %v546_v45 = vmax.f32 %v348_v40, 0.0 }
 0x103   :  { %v544_v47 = vmax.f32 %v340_v43, 0.0 }
 0x104   :  { %v600_v48 = vpack.c.bf16 %v546_v45, %v545_v44 }
 0x105   :  { %v599_v49 = vpack.c.bf16 %v544_v47, %v543_v46  ;;  %v1782_v50 = vpop.f32.mrb[20].mxu0 }
 0x106   :  { %v361_v51 = vadd.f32 %v1782_v50, %v2247_v42  ;;  %v352_v52 = vpop.f32.mrb[21].mxu0 }
 0x107   :  { %v353_v53 = vadd.f32 %v2247_v42, %v352_v52  ;;  %v1783_v54 = vpop.f32.mrb[22].mxu0  ;;  %1856 = vmatprep.mubr.bf16.mxu1 %v599_v49 }
 0x108   :  { %v364_v55 = vadd.f32 %v1783_v54, %v2247_v42  ;;  %v355_v56 = vpop.f32.mrb[23].mxu0  ;;  %1857 = vmatmul.mubr.bf16.gmra.mrb[12].mxu1 %v600_v48  ;;  %v549_v58 = vmax.f32 %v361_v51, 0.0 }
 0x109   :  { %v356_v57 = vadd.f32 %v2247_v42, %v355_v56  ;;  %v547_v60 = vmax.f32 %v353_v53, 0.0 }
 0x10a   :  { %v550_v59 = vmax.f32 %v364_v55, 0.0 }
 0x10b   :  { %v548_v61 = vmax.f32 %v356_v57, 0.0 }
 0x10c   :  { %v602_v62 = vpack.c.bf16 %v550_v59, %v549_v58 }
 0x10d   :  { %v601_v63 = vpack.c.bf16 %v548_v61, %v547_v60  ;;  %v1786_v0 = vpop.f32.mrb[24].mxu0 }
 0x10e   :  { %v377_v1 = vadd.f32 %v1786_v0, %v2247_v42  ;;  %v368_v2 = vpop.f32.mrb[25].mxu0 }
 0x10f   :  { %v369_v3 = vadd.f32 %v2247_v42, %v368_v2  ;;  %v1787_v4 = vpop.f32.mrb[26].mxu0  ;;  %1860 = vmatprep.mubr.bf16.mxu1 %v601_v63 }
 0x110   :  { %v380_v5 = vadd.f32 %v1787_v4, %v2247_v42  ;;  %v371_v6 = vpop.f32.mrb[27].mxu0  ;;  %1861 = vmatmul.mubr.bf16.gmra.mrb[16].mxu1 %v602_v62  ;;  %v553_v8 = vmax.f32 %v377_v1, 0.0 }
 0x111   :  { %v372_v7 = vadd.f32 %v2247_v42, %v371_v6  ;;  %v551_v10 = vmax.f32 %v369_v3, 0.0 }
 0x112   :  { %v554_v9 = vmax.f32 %v380_v5, 0.0 }
 0x113   :  { %v552_v11 = vmax.f32 %v372_v7, 0.0 }
 0x114   :  { %v604_v12 = vpack.c.bf16 %v554_v9, %v553_v8 }
 0x115   :  { %v603_v13 = vpack.c.bf16 %v552_v11, %v551_v10  ;;  %v1790_v14 = vpop.f32.mrb[28].mxu0 }
 0x116   :  { %v393_v15 = vadd.f32 %v1790_v14, %v2247_v42  ;;  %v384_v16 = vpop.f32.mrb[29].mxu0 }
 0x117   :  { %v385_v17 = vadd.f32 %v2247_v42, %v384_v16  ;;  %v1791_v18 = vpop.f32.mrb[30].mxu0  ;;  %1864 = vmatprep.mubr.bf16.mxu1 %v603_v13 }
 0x118   :  { %v396_v19 = vadd.f32 %v1791_v18, %v2247_v42  ;;  %v387_v20 = vpop.f32.mrb[31].mxu0  ;;  %1865 = vmatmul.mubr.bf16.gmra.mrb[20].mxu1 %v604_v12  ;;  %v557_v22 = vmax.f32 %v393_v15, 0.0 }
 0x119   :  { %v388_v21 = vadd.f32 %v2247_v42, %v387_v20  ;;  %v555_v24 = vmax.f32 %v385_v17, 0.0 }
 0x11a   :  { %v558_v23 = vmax.f32 %v396_v19, 0.0 }
 0x11b   :  { %v556_v25 = vmax.f32 %v388_v21, 0.0 }
 0x11c   :  { %v606_v26 = vpack.c.bf16 %v558_v23, %v557_v22 }
 0x11d   :  { %v605_v27 = vpack.c.bf16 %v556_v25, %v555_v24  ;;  %v1794_v28 = vpop.f32.mrb[32].mxu0 }
 0x11e   :  { %v409_v29 = vadd.f32 %v1794_v28, %v2247_v42  ;;  %v400_v30 = vpop.f32.mrb[33].mxu0 }
 0x11f   :  { %v401_v31 = vadd.f32 %v2247_v42, %v400_v30  ;;  %v1795_v32 = vpop.f32.mrb[34].mxu0  ;;  %1868 = vmatprep.mubr.bf16.mxu1 %v605_v27 }
 0x120   :  { %v412_v33 = vadd.f32 %v1795_v32, %v2247_v42  ;;  %v403_v34 = vpop.f32.mrb[35].mxu0  ;;  %1869 = vmatmul.mubr.bf16.gmra.mrb[24].mxu1 %v606_v26  ;;  %v561_v36 = vmax.f32 %v409_v29, 0.0 }
 0x121   :  { %v404_v35 = vadd.f32 %v2247_v42, %v403_v34  ;;  %v559_v38 = vmax.f32 %v401_v31, 0.0 }
 0x122   :  { %v562_v37 = vmax.f32 %v412_v33, 0.0 }
 0x123   :  { %v560_v39 = vmax.f32 %v404_v35, 0.0 }
 0x124   :  { %v608_v40 = vpack.c.bf16 %v562_v37, %v561_v36 }
 0x125   :  { %v607_v41 = vpack.c.bf16 %v560_v39, %v559_v38  ;;  %v1798_v43 = vpop.f32.mrb[36].mxu0 }
 0x126   :  { %v425_v44 = vadd.f32 %v1798_v43, %v2247_v42  ;;  %v416_v45 = vpop.f32.mrb[37].mxu0 }
 0x127   :  { %v417_v46 = vadd.f32 %v2247_v42, %v416_v45  ;;  %v1799_v47 = vpop.f32.mrb[38].mxu0  ;;  %1872 = vmatprep.mubr.bf16.mxu1 %v607_v41 }
 0x128   :  { %v428_v48 = vadd.f32 %v1799_v47, %v2247_v42  ;;  %v419_v49 = vpop.f32.mrb[39].mxu0  ;;  %1873 = vmatmul.mubr.bf16.gmra.mrb[28].mxu1 %v608_v40  ;;  %v565_v51 = vmax.f32 %v425_v44, 0.0 }
 0x129   :  { %v420_v50 = vadd.f32 %v2247_v42, %v419_v49  ;;  %v563_v53 = vmax.f32 %v417_v46, 0.0 }
 0x12a   :  { %v566_v52 = vmax.f32 %v428_v48, 0.0 }
 0x12b   :  { %v564_v54 = vmax.f32 %v420_v50, 0.0 }
 0x12c   :  { %v610_v55 = vpack.c.bf16 %v566_v52, %v565_v51 }
 0x12d   :  { %v609_v56 = vpack.c.bf16 %v564_v54, %v563_v53  ;;  %v1802_v57 = vpop.f32.mrb[40].mxu0 }
 0x12e   :  { %v441_v58 = vadd.f32 %v1802_v57, %v2247_v42  ;;  %v432_v59 = vpop.f32.mrb[41].mxu0 }
 0x12f   :  { %v433_v60 = vadd.f32 %v2247_v42, %v432_v59  ;;  %v1803_v61 = vpop.f32.mrb[42].mxu0  ;;  %1876 = vmatprep.mubr.bf16.mxu1 %v609_v56 }
 0x130   :  { %v444_v62 = vadd.f32 %v1803_v61, %v2247_v42  ;;  %v435_v63 = vpop.f32.mrb[43].mxu0  ;;  %1877 = vmatmul.mubr.bf16.gmra.mrb[32].mxu1 %v610_v55  ;;  %v569_v1 = vmax.f32 %v441_v58, 0.0 }
 0x131   :  { %v436_v0 = vadd.f32 %v2247_v42, %v435_v63  ;;  %v567_v3 = vmax.f32 %v433_v60, 0.0 }
 0x132   :  { %v570_v2 = vmax.f32 %v444_v62, 0.0 }
 0x133   :  { %v568_v4 = vmax.f32 %v436_v0, 0.0 }
 0x134   :  { %v612_v5 = vpack.c.bf16 %v570_v2, %v569_v1 }
 0x135   :  { %v611_v6 = vpack.c.bf16 %v568_v4, %v567_v3  ;;  %v1806_v7 = vpop.f32.mrb[44].mxu0 }
 0x136   :  { %v457_v8 = vadd.f32 %v1806_v7, %v2247_v42  ;;  %v448_v9 = vpop.f32.mrb[45].mxu0 }
 0x137   :  { %v449_v10 = vadd.f32 %v2247_v42, %v448_v9  ;;  %v1807_v11 = vpop.f32.mrb[46].mxu0  ;;  %1880 = vmatprep.mubr.bf16.mxu1 %v611_v6 }
 0x138   :  { %v460_v12 = vadd.f32 %v1807_v11, %v2247_v42  ;;  %v451_v13 = vpop.f32.mrb[47].mxu0  ;;  %1881 = vmatmul.mubr.bf16.gmra.mrb[36].mxu1 %v612_v5  ;;  %v573_v15 = vmax.f32 %v457_v8, 0.0 }
 0x139   :  { %v452_v14 = vadd.f32 %v2247_v42, %v451_v13  ;;  %v571_v17 = vmax.f32 %v449_v10, 0.0 }
 0x13a   :  { %v574_v16 = vmax.f32 %v460_v12, 0.0 }
 0x13b   :  { %v572_v18 = vmax.f32 %v452_v14, 0.0 }
 0x13c   :  { %v614_v19 = vpack.c.bf16 %v574_v16, %v573_v15  ;;  %v2316_v15 = vld [vmem:[%s2398_s4] ss:$0 sm:$0xff]  ;;  %s1957_s4 = smov [#allocation2]  }
 0x13d   :  { %v613_v20 = vpack.c.bf16 %v572_v18, %v571_v17  ;;  %v1810_v21 = vpop.f32.mrb[48].mxu0  ;;  %s1308_s11 = sshll.u32 %s1957_s4, 4  ;;  %s1309_s11 = int_to_ptr.vmem [resolvable:$true] %s1308_s11 }
 0x13e   :  { %v473_v22 = vadd.f32 %v1810_v21, %v2247_v42  ;;  %v464_v23 = vpop.f32.mrb[49].mxu0  ;;  %s1933_s12 = scalar_lea.vmem %s1309_s11, 4096  ;;  %p1938_p1 = scmp.lt.s32.totalorder %s1309_s11, %s1309_s11 }
 0x13f   :  { %v465_v24 = vadd.f32 %v2247_v42, %v464_v23  ;;  %v1811_v25 = vpop.f32.mrb[50].mxu0  ;;  %1884 = vmatprep.mubr.bf16.mxu1 %v613_v20  ;;  %p1934_p0 = scmp.ne.s32.totalorder %s1309_s11, %s1933_s12  ;;  %p1939_p2 = scmp.lt.s32.totalorder %s1933_s12, %s1933_s12 }
 0x140   :  { %v476_v26 = vadd.f32 %v1811_v25, %v2247_v42  ;;  %v467_v27 = vpop.f32.mrb[51].mxu0  ;;  %1885 = vmatmul.mubr.bf16.gmra.mrb[40].mxu1 %v614_v19  ;;  %v577_v29 = vmax.f32 %v473_v22, 0.0 }
 0x141   :  { %v468_v28 = vadd.f32 %v2247_v42, %v467_v27  ;;  %v575_v31 = vmax.f32 %v465_v24, 0.0  ;;  %p1940_p3 = por %p1939_p2, %p1938_p1 }
 0x142   :  { %v578_v30 = vmax.f32 %v476_v26, 0.0 }
 0x143   :  { %v576_v32 = vmax.f32 %v468_v28, 0.0  ;;  %p1941_p4 = pnand %p1940_p3, %p1934_p0 }
 0x144   :  { %v616_v33 = vpack.c.bf16 %v578_v30, %v577_v29 }
 0x145   :  { %v615_v34 = vpack.c.bf16 %v576_v32, %v575_v31  ;;  %v1814_v35 = vpop.f32.mrb[52].mxu0 }
 0x146   :  { %v489_v36 = vadd.f32 %v1814_v35, %v2247_v42  ;;  %v480_v37 = vpop.f32.mrb[53].mxu0 }
 0x147   :  { %v481_v38 = vadd.f32 %v2247_v42, %v480_v37  ;;  %v1815_v39 = vpop.f32.mrb[54].mxu0  ;;  %1888 = vmatprep.mubr.bf16.mxu1 %v615_v34 }
 0x148   :  { %v492_v40 = vadd.f32 %v1815_v39, %v2247_v42  ;;  %v483_v41 = vpop.f32.mrb[55].mxu0  ;;  %1889 = vmatmul.mubr.bf16.gmra.mrb[44].mxu1 %v616_v33  ;;  %v581_v44 = vmax.f32 %v489_v36, 0.0 }
 0x149   :  { %v484_v43 = vadd.f32 %v2247_v42, %v483_v41  ;;  %v579_v46 = vmax.f32 %v481_v38, 0.0 }
 0x14a   :  { %v582_v45 = vmax.f32 %v492_v40, 0.0 }
 0x14b   :  { %v580_v47 = vmax.f32 %v484_v43, 0.0 }
 0x14c   :  { %v618_v48 = vpack.c.bf16 %v582_v45, %v581_v44 }
 0x14d   :  { %v617_v49 = vpack.c.bf16 %v580_v47, %v579_v46  ;;  %v1818_v50 = vpop.f32.mrb[56].mxu0 }
 0x14e   :  { %v505_v51 = vadd.f32 %v1818_v50, %v2247_v42  ;;  %v496_v52 = vpop.f32.mrb[57].mxu0 }
 0x14f   :  { %v497_v53 = vadd.f32 %v2247_v42, %v496_v52  ;;  %v1819_v54 = vpop.f32.mrb[58].mxu0  ;;  %1892 = vmatprep.mubr.bf16.mxu1 %v617_v49 }
 0x150   :  { %v508_v55 = vadd.f32 %v1819_v54, %v2247_v42  ;;  %v499_v56 = vpop.f32.mrb[59].mxu0  ;;  %1893 = vmatmul.mubr.bf16.gmra.mrb[48].mxu1 %v618_v48  ;;  %v585_v58 = vmax.f32 %v505_v51, 0.0 }
 0x151   :  { %v500_v57 = vadd.f32 %v2247_v42, %v499_v56  ;;  %v583_v60 = vmax.f32 %v497_v53, 0.0 }
 0x152   :  { %v586_v59 = vmax.f32 %v508_v55, 0.0 }
 0x153   :  { %v584_v61 = vmax.f32 %v500_v57, 0.0 }
 0x154   :  { %v620_v62 = vpack.c.bf16 %v586_v59, %v585_v58 }
 0x155   :  { %v619_v63 = vpack.c.bf16 %v584_v61, %v583_v60  ;;  %v1822_v0 = vpop.f32.mrb[60].mxu0 }
 0x156   :  { %v521_v1 = vadd.f32 %v1822_v0, %v2247_v42  ;;  %v512_v2 = vpop.f32.mrb[61].mxu0 }
 0x157   :  { %v513_v3 = vadd.f32 %v2247_v42, %v512_v2  ;;  %v1823_v4 = vpop.f32.mrb[62].mxu0  ;;  %1896 = vmatprep.mubr.bf16.mxu1 %v619_v63 }
 0x158   :  { %v524_v5 = vadd.f32 %v1823_v4, %v2247_v42  ;;  %v515_v6 = vpop.f32.mrb[63].mxu0  ;;  %1897 = vmatmul.mubr.bf16.gmra.mrb[52].mxu1 %v620_v62  ;;  %v589_v8 = vmax.f32 %v521_v1, 0.0 }
 0x159   :  { %v516_v7 = vadd.f32 %v2247_v42, %v515_v6  ;;  %v587_v10 = vmax.f32 %v513_v3, 0.0 }
 0x15a   :  { %v590_v9 = vmax.f32 %v524_v5, 0.0 }
 0x15b   :  { %v588_v11 = vmax.f32 %v516_v7, 0.0 }
 0x15c   :  { %v622_v12 = vpack.c.bf16 %v590_v9, %v589_v8 }
 0x15d   :  { %v621_v13 = vpack.c.bf16 %v588_v11, %v587_v10 }
 0x15f   :  { %1900 = vmatprep.mubr.bf16.mxu1 %v621_v13 }
 0x160   :  { %1901 = vmatmul.mubr.bf16.gmra.mrb[56].mxu1 %v622_v12 }
 0x1bb   :  { %v1842_v14 = vpop.f32.mrb[64].mxu0 }
 0x1bc   :  { %v728_v16 = vpop.f32.mrb[65].mxu0  ;;  %v737_v18 = vadd.f32 %v1842_v14, %v2316_v15 }
 0x1bd   :  { %v1843_v17 = vpop.f32.mrb[66].mxu0  ;;  %v729_v20 = vadd.f32 %v2316_v15, %v728_v16 }
 0x1be   :  { %v740_v42 = vadd.f32 %v1843_v17, %v2316_v15  ;;  %v731_v19 = vpop.f32.mrb[67].mxu0 }
 0x1bf   :  { %v732_v21 = vadd.f32 %v2316_v15, %v731_v19 }
 0x1c0   :  { %v1499_v22 = vpack.c.bf16 %v740_v42, %v737_v18 }
 0x1c1   :  { %v1494_v23 = vpack.c.bf16 %v732_v21, %v729_v20 }
 0x1c2   :  { %1651 = vst [vmem:[#allocation2 + $0x8] sm:$0xff] %v1499_v22  }
 0x1c3   :  { %1495 = vst [vmem:[#allocation2] sm:$0xff] %v1494_v23   ;;  %v1846_v24 = vpop.f32.mrb[0].mxu1 }
 0x1c4   :  { %v744_v25 = vpop.f32.mrb[1].mxu1  ;;  %v753_v27 = vadd.f32 %v1846_v24, %v2316_v15 }
 0x1c5   :  { %v1847_v26 = vpop.f32.mrb[2].mxu1  ;;  %v745_v30 = vadd.f32 %v2316_v15, %v744_v25 }
 0x1c6   :  { %v756_v28 = vadd.f32 %v1847_v26, %v2316_v15  ;;  %v747_v29 = vpop.f32.mrb[3].mxu1 }
 0x1c7   :  { %v748_v31 = vadd.f32 %v2316_v15, %v747_v29 }
 0x1c8   :  { %v1509_v32 = vpack.c.bf16 %v756_v28, %v753_v27 }
 0x1c9   :  { %v1504_v33 = vpack.c.bf16 %v748_v31, %v745_v30 }
 0x1ca   :  { %1653 = vst [vmem:[#allocation2 + $0x18] sm:$0xff] %v1509_v32  }
 0x1cb   :  { %1652 = vst [vmem:[#allocation2 + $0x10] sm:$0xff] %v1504_v33   ;;  %v1850_v34 = vpop.f32.mrb[4].mxu1 }
 0x1cc   :  { %v760_v35 = vpop.f32.mrb[5].mxu1  ;;  %v769_v37 = vadd.f32 %v1850_v34, %v2316_v15 }
 0x1cd   :  { %v1851_v36 = vpop.f32.mrb[6].mxu1  ;;  %v761_v40 = vadd.f32 %v2316_v15, %v760_v35 }
 0x1ce   :  { %v772_v38 = vadd.f32 %v1851_v36, %v2316_v15  ;;  %v763_v39 = vpop.f32.mrb[7].mxu1 }
 0x1cf   :  { %v764_v41 = vadd.f32 %v2316_v15, %v763_v39 }
 0x1d0   :  { %v1519_v43 = vpack.c.bf16 %v772_v38, %v769_v37 }
 0x1d1   :  { %v1514_v44 = vpack.c.bf16 %v764_v41, %v761_v40 }
 0x1d2   :  { %1655 = vst [vmem:[#allocation2 + $0x28] sm:$0xff] %v1519_v43  }
 0x1d3   :  { %1654 = vst [vmem:[#allocation2 + $0x20] sm:$0xff] %v1514_v44   ;;  %v1854_v45 = vpop.f32.mrb[8].mxu1 }
 0x1d4   :  { %v776_v46 = vpop.f32.mrb[9].mxu1  ;;  %v785_v48 = vadd.f32 %v1854_v45, %v2316_v15 }
 0x1d5   :  { %v1855_v47 = vpop.f32.mrb[10].mxu1  ;;  %v777_v51 = vadd.f32 %v2316_v15, %v776_v46 }
 0x1d6   :  { %v788_v49 = vadd.f32 %v1855_v47, %v2316_v15  ;;  %v779_v50 = vpop.f32.mrb[11].mxu1 }
 0x1d7   :  { %v780_v52 = vadd.f32 %v2316_v15, %v779_v50 }
 0x1d8   :  { %v1529_v53 = vpack.c.bf16 %v788_v49, %v785_v48 }
 0x1d9   :  { %v1524_v54 = vpack.c.bf16 %v780_v52, %v777_v51 }
 0x1da   :  { %1657 = vst [vmem:[#allocation2 + $0x38] sm:$0xff] %v1529_v53  }
 0x1db   :  { %1656 = vst [vmem:[#allocation2 + $0x30] sm:$0xff] %v1524_v54   ;;  %v1858_v55 = vpop.f32.mrb[12].mxu1 }
 0x1dc   :  { %v792_v56 = vpop.f32.mrb[13].mxu1  ;;  %v801_v58 = vadd.f32 %v1858_v55, %v2316_v15 }
 0x1dd   :  { %v1859_v57 = vpop.f32.mrb[14].mxu1  ;;  %v793_v61 = vadd.f32 %v2316_v15, %v792_v56 }
 0x1de   :  { %v804_v59 = vadd.f32 %v1859_v57, %v2316_v15  ;;  %v795_v60 = vpop.f32.mrb[15].mxu1 }
 0x1df   :  { %v796_v62 = vadd.f32 %v2316_v15, %v795_v60 }
 0x1e0   :  { %v1539_v63 = vpack.c.bf16 %v804_v59, %v801_v58 }
 0x1e1   :  { %v1534_v0 = vpack.c.bf16 %v796_v62, %v793_v61 }
 0x1e2   :  { %1659 = vst [vmem:[#allocation2 + $0x48] sm:$0xff] %v1539_v63  }
 0x1e3   :  { %1658 = vst [vmem:[#allocation2 + $0x40] sm:$0xff] %v1534_v0   ;;  %v1862_v1 = vpop.f32.mrb[16].mxu1 }
 0x1e4   :  { %v808_v2 = vpop.f32.mrb[17].mxu1  ;;  %v817_v4 = vadd.f32 %v1862_v1, %v2316_v15 }
 0x1e5   :  { %v1863_v3 = vpop.f32.mrb[18].mxu1  ;;  %v809_v7 = vadd.f32 %v2316_v15, %v808_v2 }
 0x1e6   :  { %v820_v5 = vadd.f32 %v1863_v3, %v2316_v15  ;;  %v811_v6 = vpop.f32.mrb[19].mxu1 }
 0x1e7   :  { %v812_v8 = vadd.f32 %v2316_v15, %v811_v6 }
 0x1e8   :  { %v1549_v9 = vpack.c.bf16 %v820_v5, %v817_v4 }
 0x1e9   :  { %v1544_v10 = vpack.c.bf16 %v812_v8, %v809_v7 }
 0x1ea   :  { %1661 = vst [vmem:[#allocation2 + $0x58] sm:$0xff] %v1549_v9  }
 0x1eb   :  { %1660 = vst [vmem:[#allocation2 + $0x50] sm:$0xff] %v1544_v10   ;;  %v1866_v11 = vpop.f32.mrb[20].mxu1 }
 0x1ec   :  { %v824_v12 = vpop.f32.mrb[21].mxu1  ;;  %v833_v14 = vadd.f32 %v1866_v11, %v2316_v15 }
 0x1ed   :  { %v1867_v13 = vpop.f32.mrb[22].mxu1  ;;  %v825_v18 = vadd.f32 %v2316_v15, %v824_v12 }
 0x1ee   :  { %v836_v16 = vadd.f32 %v1867_v13, %v2316_v15  ;;  %v827_v17 = vpop.f32.mrb[23].mxu1 }
 0x1ef   :  { %v828_v42 = vadd.f32 %v2316_v15, %v827_v17 }
 0x1f0   :  { %v1559_v19 = vpack.c.bf16 %v836_v16, %v833_v14 }
 0x1f1   :  { %v1554_v20 = vpack.c.bf16 %v828_v42, %v825_v18 }
 0x1f2   :  { %1663 = vst [vmem:[#allocation2 + $0x68] sm:$0xff] %v1559_v19  }
 0x1f3   :  { %1662 = vst [vmem:[#allocation2 + $0x60] sm:$0xff] %v1554_v20   ;;  %v1870_v21 = vpop.f32.mrb[24].mxu1 }
 0x1f4   :  { %v840_v22 = vpop.f32.mrb[25].mxu1  ;;  %v849_v24 = vadd.f32 %v1870_v21, %v2316_v15 }
 0x1f5   :  { %v1871_v23 = vpop.f32.mrb[26].mxu1  ;;  %v841_v27 = vadd.f32 %v2316_v15, %v840_v22 }
 0x1f6   :  { %v852_v25 = vadd.f32 %v1871_v23, %v2316_v15  ;;  %v843_v26 = vpop.f32.mrb[27].mxu1 }
 0x1f7   :  { %v844_v28 = vadd.f32 %v2316_v15, %v843_v26 }
 0x1f8   :  { %v1569_v29 = vpack.c.bf16 %v852_v25, %v849_v24 }
 0x1f9   :  { %v1564_v30 = vpack.c.bf16 %v844_v28, %v841_v27 }
 0x1fa   :  { %1665 = vst [vmem:[#allocation2 + $0x78] sm:$0xff] %v1569_v29  }
 0x1fb   :  { %1664 = vst [vmem:[#allocation2 + $0x70] sm:$0xff] %v1564_v30   ;;  %v1874_v31 = vpop.f32.mrb[28].mxu1 }
 0x1fc   :  { %v856_v32 = vpop.f32.mrb[29].mxu1  ;;  %v865_v34 = vadd.f32 %v1874_v31, %v2316_v15 }
 0x1fd   :  { %v1875_v33 = vpop.f32.mrb[30].mxu1  ;;  %v857_v37 = vadd.f32 %v2316_v15, %v856_v32 }
 0x1fe   :  { %v868_v35 = vadd.f32 %v1875_v33, %v2316_v15  ;;  %v859_v36 = vpop.f32.mrb[31].mxu1 }
 0x1ff   :  { %v860_v38 = vadd.f32 %v2316_v15, %v859_v36 }
 0x200   :  { %v1579_v39 = vpack.c.bf16 %v868_v35, %v865_v34 }
 0x201   :  { %v1574_v40 = vpack.c.bf16 %v860_v38, %v857_v37 }
 0x202   :  { %1667 = vst [vmem:[#allocation2 + $0x88] sm:$0xff] %v1579_v39  }
 0x203   :  { %1666 = vst [vmem:[#allocation2 + $0x80] sm:$0xff] %v1574_v40   ;;  %v1878_v41 = vpop.f32.mrb[32].mxu1 }
 0x204   :  { %v872_v43 = vpop.f32.mrb[33].mxu1  ;;  %v881_v45 = vadd.f32 %v1878_v41, %v2316_v15 }
 0x205   :  { %v1879_v44 = vpop.f32.mrb[34].mxu1  ;;  %v873_v48 = vadd.f32 %v2316_v15, %v872_v43 }
 0x206   :  { %v884_v46 = vadd.f32 %v1879_v44, %v2316_v15  ;;  %v875_v47 = vpop.f32.mrb[35].mxu1 }
 0x207   :  { %v876_v49 = vadd.f32 %v2316_v15, %v875_v47 }
 0x208   :  { %v1589_v50 = vpack.c.bf16 %v884_v46, %v881_v45 }
 0x209   :  { %v1584_v51 = vpack.c.bf16 %v876_v49, %v873_v48 }
 0x20a   :  { %1669 = vst [vmem:[#allocation2 + $0x98] sm:$0xff] %v1589_v50  }
 0x20b   :  { %1668 = vst [vmem:[#allocation2 + $0x90] sm:$0xff] %v1584_v51   ;;  %v1882_v52 = vpop.f32.mrb[36].mxu1 }
 0x20c   :  { %v888_v53 = vpop.f32.mrb[37].mxu1  ;;  %v897_v55 = vadd.f32 %v1882_v52, %v2316_v15 }
 0x20d   :  { %v1883_v54 = vpop.f32.mrb[38].mxu1  ;;  %v889_v58 = vadd.f32 %v2316_v15, %v888_v53 }
 0x20e   :  { %v900_v56 = vadd.f32 %v1883_v54, %v2316_v15  ;;  %v891_v57 = vpop.f32.mrb[39].mxu1 }
 0x20f   :  { %v892_v59 = vadd.f32 %v2316_v15, %v891_v57 }
 0x210   :  { %v1599_v60 = vpack.c.bf16 %v900_v56, %v897_v55 }
 0x211   :  { %v1594_v61 = vpack.c.bf16 %v892_v59, %v889_v58 }
 0x212   :  { %1671 = vst [vmem:[#allocation2 + $0xa8] sm:$0xff] %v1599_v60  }
 0x213   :  { %1670 = vst [vmem:[#allocation2 + $0xa0] sm:$0xff] %v1594_v61   ;;  %v1886_v62 = vpop.f32.mrb[40].mxu1 }
 0x214   :  { %v904_v63 = vpop.f32.mrb[41].mxu1  ;;  %v913_v1 = vadd.f32 %v1886_v62, %v2316_v15 }
 0x215   :  { %v1887_v0 = vpop.f32.mrb[42].mxu1  ;;  %v905_v4 = vadd.f32 %v2316_v15, %v904_v63 }
 0x216   :  { %v916_v2 = vadd.f32 %v1887_v0, %v2316_v15  ;;  %v907_v3 = vpop.f32.mrb[43].mxu1 }
 0x217   :  { %v908_v5 = vadd.f32 %v2316_v15, %v907_v3 }
 0x218   :  { %v1609_v6 = vpack.c.bf16 %v916_v2, %v913_v1 }
 0x219   :  { %v1604_v7 = vpack.c.bf16 %v908_v5, %v905_v4 }
 0x21a   :  { %1673 = vst [vmem:[#allocation2 + $0xb8] sm:$0xff] %v1609_v6  }
 0x21b   :  { %1672 = vst [vmem:[#allocation2 + $0xb0] sm:$0xff] %v1604_v7   ;;  %v1890_v8 = vpop.f32.mrb[44].mxu1 }
 0x21c   :  { %v920_v9 = vpop.f32.mrb[45].mxu1  ;;  %v929_v11 = vadd.f32 %v1890_v8, %v2316_v15 }
 0x21d   :  { %v1891_v10 = vpop.f32.mrb[46].mxu1  ;;  %v921_v14 = vadd.f32 %v2316_v15, %v920_v9 }
 0x21e   :  { %v932_v12 = vadd.f32 %v1891_v10, %v2316_v15  ;;  %v923_v13 = vpop.f32.mrb[47].mxu1 }
 0x21f   :  { %v924_v16 = vadd.f32 %v2316_v15, %v923_v13 }
 0x220   :  { %v1619_v17 = vpack.c.bf16 %v932_v12, %v929_v11 }
 0x221   :  { %v1614_v18 = vpack.c.bf16 %v924_v16, %v921_v14 }
 0x222   :  { %1675 = vst [vmem:[#allocation2 + $0xc8] sm:$0xff] %v1619_v17  }
 0x223   :  { %1674 = vst [vmem:[#allocation2 + $0xc0] sm:$0xff] %v1614_v18   ;;  %v1894_v42 = vpop.f32.mrb[48].mxu1 }
 0x224   :  { %v936_v19 = vpop.f32.mrb[49].mxu1  ;;  %v945_v21 = vadd.f32 %v1894_v42, %v2316_v15 }
 0x225   :  { %v1895_v20 = vpop.f32.mrb[50].mxu1  ;;  %v937_v24 = vadd.f32 %v2316_v15, %v936_v19 }
 0x226   :  { %v948_v22 = vadd.f32 %v1895_v20, %v2316_v15  ;;  %v939_v23 = vpop.f32.mrb[51].mxu1 }
 0x227   :  { %v940_v25 = vadd.f32 %v2316_v15, %v939_v23 }
 0x228   :  { %v1629_v26 = vpack.c.bf16 %v948_v22, %v945_v21 }
 0x229   :  { %v1624_v27 = vpack.c.bf16 %v940_v25, %v937_v24 }
 0x22a   :  { %1677 = vst [vmem:[#allocation2 + $0xd8] sm:$0xff] %v1629_v26  }
 0x22b   :  { %1676 = vst [vmem:[#allocation2 + $0xd0] sm:$0xff] %v1624_v27   ;;  %v1898_v28 = vpop.f32.mrb[52].mxu1 }
 0x22c   :  { %v952_v29 = vpop.f32.mrb[53].mxu1  ;;  %v961_v31 = vadd.f32 %v1898_v28, %v2316_v15 }
 0x22d   :  { %v1899_v30 = vpop.f32.mrb[54].mxu1  ;;  %v953_v34 = vadd.f32 %v2316_v15, %v952_v29 }
 0x22e   :  { %v964_v32 = vadd.f32 %v1899_v30, %v2316_v15  ;;  %v955_v33 = vpop.f32.mrb[55].mxu1 }
 0x22f   :  { %v956_v35 = vadd.f32 %v2316_v15, %v955_v33 }
 0x230   :  { %v1639_v36 = vpack.c.bf16 %v964_v32, %v961_v31 }
 0x231   :  { %v1634_v37 = vpack.c.bf16 %v956_v35, %v953_v34 }
 0x232   :  { %1679 = vst [vmem:[#allocation2 + $0xe8] sm:$0xff] %v1639_v36  }
 0x233   :  { %1678 = vst [vmem:[#allocation2 + $0xe0] sm:$0xff] %v1634_v37   ;;  %v1902_v38 = vpop.f32.mrb[56].mxu1 }
 0x234   :  { %v968_v39 = vpop.f32.mrb[57].mxu1  ;;  %v977_v41 = vadd.f32 %v1902_v38, %v2316_v15 }
 0x235   :  { %v1903_v40 = vpop.f32.mrb[58].mxu1  ;;  %v969_v45 = vadd.f32 %v2316_v15, %v968_v39 }
 0x236   :  { %v980_v43 = vadd.f32 %v1903_v40, %v2316_v15  ;;  %v971_v44 = vpop.f32.mrb[59].mxu1 }
 0x237   :  { %v972_v46 = vadd.f32 %v2316_v15, %v971_v44 }
 0x238   :  { %v1649_v47 = vpack.c.bf16 %v980_v43, %v977_v41 }
 0x239   :  { %v1644_v48 = vpack.c.bf16 %v972_v46, %v969_v45 }
 0x23a   :  { %1681 = vst [vmem:[#allocation2 + $0xf8] sm:$0xff] %v1649_v47  }
 0x23b   :  { %1680 = vst [vmem:[#allocation2 + $0xf0] sm:$0xff] %v1644_v48  }
 0x23c   :  { %1944 = shalt.err (!%p1941_p4)
}
 0x23d   :  { %s1945_s15 = scalar_lea.hbm %s2399_s5, 4096 }
 0x23e   :  { %p1946_p5 = scmp.ne.s32.totalorder %s2399_s5, %s1945_s15  ;;  %p1949_p6 = scmp.lt.u32.totalorder %s1945_s15, %s2399_s5 }
 0x240   :  { %p1951_p7 = pnand %p1949_p6, %p1946_p5 }
 0x242   :  { %1954 = shalt.err (!%p1951_p7)
}
 0x243   :  { %s1958_s19 = smov 64   ;;  %s1959_s20 = smov 4  }
 0x244   :  { %1314 = dma.vmem_to_hbm [thread:$0]  %s1309_s11, 4096, %s2399_s5, [#allocation3], %s1958_s19, %s1958_s19, %s1959_s20  }
 0x245   :  { %1955 = dma.done.wait [#allocation3], 4096  }
 0x246   :  { %1956 = vsyncadd [#allocation3], 4294963200 }
 0x247   :  { %1318 = vsyncpa [#allocation3], 1 }

</bundles_post_ra>
